<compile_context>
chip_gen: v5e
topology: v5e:2x2
jax: 0.10.0
libtpu: 0.0.40
codegen_flags: <defaults>
</compile_context>

<pallas_src>
import functools

import jax
import jax.numpy as jnp
from jax import lax
from jax.experimental import pallas as pl
from jax.experimental.pallas import tpu as pltpu

LANES = 128
SUBLANES = 8
TARGET_BLOCK_ROWS = 1024  # 512 KiB per f32 input block; ~4 MiB live with double-buffering


def _round_up(x, m):
    return ((x + m - 1) // m) * m


def _powered_abs(diff, exponent):
    """|diff| ** exponent with the power specialized at trace time (exponent is static)."""
    exponent = float(exponent)
    a = jnp.abs(diff)
    if exponent == 1.0:
        return a
    if exponent == 2.0:
        return diff * diff
    if exponent.is_integer():
        return lax.integer_pow(a, int(exponent))
    if (2.0 * exponent).is_integer() and exponent > 0:
        # half-integer: |x|**(k + 0.5) = |x|**k * sqrt(|x|)  -> single EUP sqrt, VPU muls
        k = int(exponent)
        r = jnp.sqrt(a)
        if k:
            r = r * lax.integer_pow(a, k)
        return r
    # general fallback (exp/log on EUP) -- only taken for irrational exponents
    return jnp.power(a, jnp.float32(exponent))


def _mpe_kernel(o_ref, t_ref, partial_ref, *, exponent, valid_rows, block_rows):
    diff = o_ref[...].astype(jnp.float32) - t_ref[...].astype(jnp.float32)
    powered = _powered_abs(diff, exponent)

    if valid_rows % block_rows != 0:
        # Last block overhangs the input rows: mask out-of-bounds rows (static count).
        row_ids = (lax.broadcasted_iota(jnp.int32, powered.shape, 0)
                   + pl.program_id(0) * block_rows)
        powered = jnp.where(row_ids < valid_rows, powered, jnp.float32(0.0))

    # Leading-axis sum = pure elementwise VPU vreg adds (no in-loop cross-lane XLU work).
    partial_ref[...] = powered.reshape(-1, SUBLANES, LANES).sum(axis=0)


def mean_powered_error_loss(output, target, exponent):
    """JAX/Pallas equivalent of MeanPoweredErrorLoss.forward."""
    assert output.shape == target.shape, "shapes must match (no broadcasting needed)"
    n = output.size

    flat_o = jnp.ravel(output)  # keep native dtype: no HBM-doubling f32 copy
    flat_t = jnp.ravel(target)

    # Sublane alignment: 8 rows for 32-bit, 16 for bf16, 32 for 8-bit inputs.
    itemsize = min(jnp.dtype(output.dtype).itemsize, jnp.dtype(target.dtype).itemsize)
    row_align = SUBLANES * max(1, 4 // max(1, itemsize))

    rows = n // LANES
    n_bulk = rows * LANES

    # Tiny (< 128 element) tail handled in plain JAX instead of padding the whole array.
    if n_bulk < n:
        tail_diff = (flat_o[n_bulk:].astype(jnp.float32)
                     - flat_t[n_bulk:].astype(jnp.float32))
        tail_sum = jnp.sum(_powered_abs(tail_diff, exponent), dtype=jnp.float32)
    else:
        tail_sum = jnp.float32(0.0)

    if rows == 0:
        return tail_sum / jnp.float32(n)

    block_rows = min(TARGET_BLOCK_ROWS, _round_up(rows, row_align))
    num_blocks = pl.cdiv(rows, block_rows)

    x2 = flat_o[:n_bulk].reshape(rows, LANES)
    y2 = flat_t[:n_bulk].reshape(rows, LANES)

    kernel = functools.partial(
        _mpe_kernel,
        exponent=float(exponent),
        valid_rows=rows,
        block_rows=block_rows,
    )

    partials = pl.pallas_call(
        kernel,
        out_shape=jax.ShapeDtypeStruct((num_blocks * SUBLANES, LANES), jnp.float32),
        grid_spec=pltpu.PrefetchScalarGridSpec(
            num_scalar_prefetch=0,
            grid=(num_blocks,),
            in_specs=[
                pl.BlockSpec((block_rows, LANES), lambda i: (i, 0)),
                pl.BlockSpec((block_rows, LANES), lambda i: (i, 0)),
            ],
            out_specs=pl.BlockSpec((SUBLANES, LANES), lambda i: (i, 0)),
        ),
        compiler_params=pltpu.CompilerParams(
            # No grid-carried dependency (per-block partial outputs) -> parallel,
            # so v7x can shard the grid across both TensorCores.
            dimension_semantics=("parallel",),
        ),
    )(x2, y2)

    total = jnp.sum(partials, dtype=jnp.float32) + tail_sum
    return total / jnp.float32(n)


if __name__ == "__main__":
    key = jax.random.PRNGKey(0)
    k1, k2 = jax.random.split(key)

    # Small NCHW-like shapes consistent with a generic loss over image tensors.
    output = jax.random.normal(k1, (2, 4, 16, 16), dtype=jnp.float32)
    target = jax.random.normal(k2, (2, 4, 16, 16), dtype=jnp.float32)
    exponent = 1.5

    loss = mean_powered_error_loss(output, target, exponent)
    loss = jax.block_until_ready(loss)

    # Reference check in plain JAX.
    ref = jnp.mean(jnp.abs(output - target) ** exponent)
    assert jnp.allclose(loss, ref, rtol=1e-5, atol=1e-6), (loss, ref)

    print("KERNEL_OK")
</pallas_src>

<mosaic_0001>
module attributes {stable_mosaic.version = 11 : i64} {
  func.func @_mpe_kernel(%arg0: i32, %arg1: memref<16x128xf32, #tpu.memory_space<vmem>>, %arg2: memref<16x128xf32, #tpu.memory_space<vmem>>, %arg3: memref<8x128xf32, #tpu.memory_space<vmem>>) attributes {dimension_semantics = [#tpu.dimension_semantics<parallel>], iteration_bounds = array<i64: 1>, scalar_prefetch = 0 : i64, scratch_operands = 0 : i64, tpu.core_type = #tpu.core_type<tc>, window_params = [{transform_indices = @transform_0, window_bounds = array<i64: 16, 128>}, {transform_indices = @transform_1, window_bounds = array<i64: 16, 128>}, {transform_indices = @transform_2, window_bounds = array<i64: 8, 128>}]} {
    %c0 = arith.constant 0 : index
    %c0_0 = arith.constant 0 : index
    %0 = vector.load %arg1[%c0, %c0_0] : memref<16x128xf32, #tpu.memory_space<vmem>>, vector<16x128xf32>
    %c0_1 = arith.constant 0 : index
    %c0_2 = arith.constant 0 : index
    %1 = vector.load %arg2[%c0_1, %c0_2] : memref<16x128xf32, #tpu.memory_space<vmem>>, vector<16x128xf32>
    %2 = arith.subf %0, %1 : vector<16x128xf32>
    %3 = math.absf %2 : vector<16x128xf32>
    %4 = math.sqrt %3 : vector<16x128xf32>
    %5 = arith.mulf %4, %3 : vector<16x128xf32>
    %6 = vector.shape_cast %5 : vector<16x128xf32> to vector<2x8x128xf32>
    %cst = arith.constant dense<0.000000e+00> : vector<8x128xf32>
    %7 = vector.multi_reduction <add>, %6, %cst [0] : vector<2x8x128xf32> to vector<8x128xf32>
    %c0_3 = arith.constant 0 : index
    %c0_4 = arith.constant 0 : index
    %8 = vector.load %arg3[%c0_3, %c0_4] : memref<8x128xf32, #tpu.memory_space<vmem>>, vector<8x128xf32>
    tpu.vector_store %arg3[%c0_3, %c0_4], %7 {strides = array<i32>} : memref<8x128xf32, #tpu.memory_space<vmem>>, vector<8x128xf32>,
    return
  }
  func.func @transform_0(%arg0: i32) -> (i32, i32) {
    %c0_i32 = arith.constant 0 : i32
    %c0_i32_0 = arith.constant 0 : i32
    return %arg0, %c0_i32 : i32, i32
  }
  func.func @transform_1(%arg0: i32) -> (i32, i32) {
    %c0_i32 = arith.constant 0 : i32
    %c0_i32_0 = arith.constant 0 : i32
    return %arg0, %c0_i32 : i32, i32
  }
  func.func @transform_2(%arg0: i32) -> (i32, i32) {
    %c0_i32 = arith.constant 0 : i32
    %c0_i32_0 = arith.constant 0 : i32
    return %arg0, %c0_i32 : i32, i32
  }
}

</mosaic_0001>

<bundles_post_ra>
// kernel: tpu_custom_call.1
= control target key start
LH: loop header
LB: loop body
LE: loop exit
PB: predicated region body
PF: predicated region fallthrough
CT: control target
= control target key end

     0   :  { %7 = vsyncpa [#allocation3], 0  ;;  %s214_s0 = inlined_call_operand.hbm [shape: f32[16,128], index: 0, kind: input, shape index: {}]   ;;  %s215_s1 = inlined_call_operand.hbm [shape: f32[16,128], index: 1, kind: input, shape index: {}]   ;;  %s216_s2 = inlined_call_operand.hbm [shape: f32[8,128], index: 2, kind: output, shape index: {}]  }
   0x1   :  { %8 = vsyncpa [#allocation6], 0 }
   0x2   :  { %9 = vsyncpa [#allocation4], 0  ;;  %s14_s11 = sshll.u32 %s214_s0, 4  ;;  %s185_s12 = smov [#allocation2]   ;;  %s15_s11 = int_to_ptr.hbm [resolvable:$true] %s14_s11 }
   0x3   :  { %s16_s13 = sshll.u32 %s185_s12, 4  ;;  %s27_s16 = sshll.u32 %s215_s1, 4  ;;  %s17_s13 = int_to_ptr.vmem [resolvable:$true] %s16_s13  ;;  %s28_s16 = int_to_ptr.hbm [resolvable:$true] %s27_s16 }
   0x4   :  { %s186_s17 = smov 128   ;;  %s187_s18 = smov 8  }
   0x5   :  { %22 = dma.hbm_to_vmem [thread:$0]  %s15_s11, 256, %s17_s13, [#allocation3], %s186_s17, %s186_s17, %s187_s18  }
   0x6   :  { %s188_s19 = smov [#allocation5]  }
   0x7   :  { %s29_s20 = sshll.u32 %s188_s19, 4  ;;  %s30_s20 = int_to_ptr.vmem [resolvable:$true] %s29_s20 }
   0x8   :  { %35 = dma.hbm_to_vmem [thread:$0]  %s28_s16, 256, %s30_s20, [#allocation6], %s186_s17, %s186_s17, %s187_s18  }
   0x9   :  { %179 = dma.done.wait [#allocation3], 256  }
   0xa   :  { %180 = vsyncadd [#allocation3], 4294967040 }
   0xb   :  { %181 = dma.done.wait [#allocation6], 256  }
   0xc   :  { %182 = vsyncadd [#allocation6], 4294967040  ;;  %v44_v0 = vld [vmem:[#allocation2] sm:$0xff]  ;;  %v45_v1 = vld [vmem:[#allocation2 + $0x8] sm:$0xff]  ;;  %s189_s0 = smov [#allocation7]   ;;  %s87_s23 = sshll.u32 %s216_s2, 4  ;;  %s88_s23 = int_to_ptr.hbm [resolvable:$true] %s87_s23 }
   0xd   :  { %v46_v2 = vld [vmem:[#allocation5] sm:$0xff]  ;;  %v47_v3 = vld [vmem:[#allocation5 + $0x8] sm:$0xff]  ;;  %s85_s1 = sshll.u32 %s189_s0, 4  ;;  %s86_s1 = int_to_ptr.vmem [resolvable:$true] %s85_s1 }
   0xe   :  { %v48_v4 = vsub.f32 %v44_v0, %v46_v2  ;;  %v49_v5 = vsub.f32 %v45_v1, %v47_v3 }
  0x10   :  { %v50_v6 = vand.u32 2147483647, %v48_v4  ;;  %v51_v7 = vand.u32 2147483647, %v49_v5 }
  0x12   :  { %103 = vrsqrt.f32 %v50_v6  ;;  %vm59_vm0 = vcmp.eq.f32.partialorder %v50_v6, inf  ;;  %v62_v19 = vand.u32 2147483648, %v50_v6  ;;  %vm61_vm1 = vcmp.eq.f32.partialorder %v50_v6, 0.0 }
  0x13   :  { %105 = vrsqrt.f32 %v51_v7  ;;  %vm71_vm2 = vcmp.eq.f32.partialorder %v51_v7, inf  ;;  %v74_v22 = vand.u32 2147483648, %v51_v7  ;;  %vm73_vm3 = vcmp.eq.f32.partialorder %v51_v7, 0.0 }
  0x18   :  { %v104_v8 = vpop.eup %103 }
  0x19   :  { %v106_v9 = vpop.eup %105  ;;  %v53_v10 = vmul.f32 %v104_v8, %v50_v6 }
  0x1a   :  { %v65_v11 = vmul.f32 %v106_v9, %v51_v7 }
  0x1b   :  { %v54_v12 = vmul.f32 %v104_v8, %v53_v10 }
  0x1c   :  { %v66_v13 = vmul.f32 %v106_v9, %v65_v11 }
  0x1d   :  { %v55_v14 = vmul.f32 0.5, %v54_v12 }
  0x1e   :  { %v67_v15 = vmul.f32 0.5, %v66_v13 }
  0x1f   :  { %v56_v16 = vsub.f32 1.5, %v55_v14 }
  0x20   :  { %v68_v17 = vsub.f32 1.5, %v67_v15 }
  0x21   :  { %v57_v18 = vmul.f32 %v104_v8, %v56_v16 }
  0x22   :  { %v69_v20 = vmul.f32 %v106_v9, %v68_v17 }
  0x23   :  { %v58_v21 = vmul.f32 %v57_v18, %v50_v6 }
  0x24   :  { %v70_v23 = vmul.f32 %v69_v20, %v51_v7 }
  0x25   :  { %v60_v24 = vsel %vm59_vm0, %v50_v6, %v58_v21 }
  0x26   :  { %v63_v25 = vsel %vm61_vm1, %v62_v19, %v60_v24  ;;  %v72_v26 = vsel %vm71_vm2, %v51_v7, %v70_v23 }
  0x27   :  { %v75_v27 = vsel %vm73_vm3, %v74_v22, %v72_v26  ;;  %v76_v28 = vmul.f32 %v63_v25, %v50_v6 }
  0x28   :  { %v77_v29 = vmul.f32 %v75_v27, %v51_v7 }
  0x2a   :  { %v78_v30 = vadd.f32 %v77_v29, %v76_v28 }
  0x2c   :  { %79 = vst [vmem:[#allocation7] sm:$0xff] %v78_v30 }
  0x2d   :  { %90 = dma.vmem_to_hbm [thread:$0]  %s86_s1, 128, %s88_s23, [#allocation4]  }
  0x2e   :  { %183 = dma.done.wait [#allocation4], 128  }
  0x2f   :  { %184 = vsyncadd [#allocation4], 4294967168 }
  0x30   :  { %95 = vsyncpa [#allocation3], 1 }
  0x31   :  { %96 = vsyncpa [#allocation6], 1 }
  0x32   :  { %97 = vsyncpa [#allocation4], 1 }

</bundles_post_ra>
